<compile_context>
chip_gen: v6e
topology: v6e:2x2x1
jax: 0.10.0
libtpu: 0.0.40
codegen_flags: <defaults>
</compile_context>

<pallas_src>
import math
import functools

import jax
import jax.numpy as jnp
from jax.experimental import pallas as pl
from jax.experimental.pallas import tpu as pltpu


def make_pe_buffer(max_len, d_model, dtype=jnp.float32):
    """Deterministic sinusoidal positional-encoding buffer (same as __init__)."""
    position = jnp.arange(max_len, dtype=jnp.float32)[:, None]                 # (L, 1)
    div_term = jnp.exp(
        jnp.arange(0, d_model, 2, dtype=jnp.float32) * (-math.log(10000.0) / d_model)
    )                                                                          # (D/2,)
    pe = jnp.zeros((max_len, d_model), dtype=jnp.float32)
    pe = pe.at[:, 0::2].set(jnp.sin(position * div_term))
    pe = pe.at[:, 1::2].set(jnp.cos(position * div_term))
    return pe.astype(dtype)


def _mix_u32(h):
    """murmur3 finalizer — per-element bit mixing with only uint32 VPU ops."""
    h = h ^ (h >> jnp.uint32(16))
    h = h * jnp.uint32(0x85EBCA6B)
    h = h ^ (h >> jnp.uint32(13))
    h = h * jnp.uint32(0xC2B2AE35)
    h = h ^ (h >> jnp.uint32(16))
    return h


def _pe_add_dropout_kernel(seed_ref, x_ref, pe_ref, o_ref, *,
                           p, apply_dropout, S, D, TS):
    # x_ref / pe_ref / o_ref: (TS, D) VMEM tiles (batch dim squeezed from block)
    # seed_ref: (1,) int32 in SMEM
    val = x_ref[...] + pe_ref[...]          # stays in x dtype (bf16-friendly)

    if apply_dropout:
        # Inverted dropout: drop with prob p, scale survivors by 1/(1-p).
        # Counter-based RNG: hash(global element index, seed) -> uint32 bits.
        b = pl.program_id(0)
        s = pl.program_id(1)
        rows = jax.lax.broadcasted_iota(jnp.int32, (TS, D), 0) + s * TS
        cols = jax.lax.broadcasted_iota(jnp.int32, (TS, D), 1)
        lin = (b * S + rows) * D + cols                      # unique per element
        h = lin.astype(jnp.uint32) * jnp.uint32(0x9E3779B9)
        h = h + seed_ref[0].astype(jnp.uint32)
        bits = _mix_u32(h)
        # Integer-domain keep test: P(keep) = 1 - p.
        thresh = jnp.uint32(min(int(round(p * 4294967296.0)), 0xFFFFFFFF))
        keep = bits >= thresh
        scale = jnp.asarray(1.0 / (1.0 - p), dtype=val.dtype)
        val = jnp.where(keep, val * scale, jnp.zeros_like(val))

    o_ref[...] = val.astype(o_ref.dtype)


def positional_encoding_forward(x, pe, seed, *, p=0.1, training=True, seq_tile=512):
    """x: (B, S, D); pe: (max_len, D) buffer; seed: (1,) int32."""
    B, S, D = x.shape
    pe_s = pe[:S, :].astype(x.dtype)        # slice + pre-cast once (outside kernel)
    TS = min(S, seq_tile)                   # ~TS*D*4B per tile; multiple of 8 or == S
    grid = (B, pl.cdiv(S, TS))
    kernel = functools.partial(
        _pe_add_dropout_kernel,
        p=float(p), apply_dropout=bool(training and p > 0.0), S=S, D=D, TS=TS,
    )
    return pl.pallas_call(
        kernel,
        out_shape=jax.ShapeDtypeStruct((B, S, D), x.dtype),
        grid=grid,
        in_specs=[
            pl.BlockSpec(memory_space=pltpu.MemorySpace.SMEM),       # seed scalar
            pl.BlockSpec((None, TS, D), lambda b, s: (b, s, 0)),     # x tile (batch squeezed)
            pl.BlockSpec((TS, D), lambda b, s: (s, 0)),              # pe tile
        ],
        out_specs=pl.BlockSpec((None, TS, D), lambda b, s: (b, s, 0)),
        compiler_params=pltpu.CompilerParams(
            dimension_semantics=("parallel", "parallel"),            # dual-TC v7x
        ),
    )(seed, x, pe_s)


if __name__ == "__main__":
    # Small shapes consistent with the module: batch=2, seq=8, d_model=32.
    B, S, D = 2, 8, 32
    MAX_LEN = 128  # stand-in for max_len=5000 (buffer shape only; sliced to S)

    key = jax.random.PRNGKey(0)
    x = jax.random.normal(key, (B, S, D), dtype=jnp.float32)
    pe = make_pe_buffer(MAX_LEN, D)
    seed = jnp.array([0], dtype=jnp.int32)

    # Eval-mode pass (dropout = identity): check exact semantics of x + pe.
    out_eval = positional_encoding_forward(x, pe, seed, p=0.1, training=False)
    out_eval = jax.block_until_ready(out_eval)
    ref_eval = x + pe[:S, :][None, :, :]
    assert out_eval.shape == (B, S, D)
    assert jnp.allclose(out_eval, ref_eval, atol=1e-6, rtol=1e-6)

    # Training-mode pass (dropout p=0.1 via in-kernel counter-based hash RNG).
    # TODO(synk): RNG stream is a counter-hash, not torch's RNG — masks differ from PyTorch.
    out_train = positional_encoding_forward(x, pe, seed, p=0.1, training=True)
    out_train = jax.block_until_ready(out_train)
    assert out_train.shape == (B, S, D)
    # Surviving elements are (x+pe)/(1-p), dropped are 0.
    nz = out_train != 0
    scaled = ref_eval / 0.9
    assert jnp.allclose(jnp.where(nz, out_train, scaled), scaled, atol=1e-5, rtol=1e-5)
    # Loose sanity check on drop rate (p=0.1 over 512 elements).
    keep_frac = float(jnp.mean(nz.astype(jnp.float32)))
    assert 0.5 < keep_frac <= 1.0

    print("KERNEL_OK")
</pallas_src>

<mosaic_0001>
module attributes {stable_mosaic.version = 11 : i64} {
  func.func @_pe_add_dropout_kernel(%arg0: i32, %arg1: i32, %arg2: memref<1xi32, #tpu.memory_space<smem>>, %arg3: memref<1x8x32xf32, #tpu.memory_space<vmem>>, %arg4: memref<8x32xf32, #tpu.memory_space<vmem>>, %arg5: memref<1x8x32xf32, #tpu.memory_space<vmem>>) attributes {dimension_semantics = [#tpu.dimension_semantics<parallel>, #tpu.dimension_semantics<parallel>], iteration_bounds = array<i64: 2, 1>, scalar_prefetch = 0 : i64, scratch_operands = 0 : i64, tpu.core_type = #tpu.core_type<tc>, window_params = [{transform_indices = @transform_0, window_bounds = array<i64: 1>}, {transform_indices = @transform_1, window_bounds = array<i64: 1, 8, 32>}, {transform_indices = @transform_2, window_bounds = array<i64: 8, 32>}, {transform_indices = @transform_3, window_bounds = array<i64: 1, 8, 32>}]} {
    %c0 = arith.constant 0 : index
    %c0_0 = arith.constant 0 : index
    %c0_1 = arith.constant 0 : index
    %0 = vector.load %arg3[%c0, %c0_0, %c0_1] : memref<1x8x32xf32, #tpu.memory_space<vmem>>, vector<1x8x32xf32>
    %1 = vector.shape_cast %0 : vector<1x8x32xf32> to vector<8x32xf32>
    %c0_2 = arith.constant 0 : index
    %c0_3 = arith.constant 0 : index
    %2 = vector.load %arg4[%c0_2, %c0_3] : memref<8x32xf32, #tpu.memory_space<vmem>>, vector<8x32xf32>
    %3 = arith.addf %1, %2 : vector<8x32xf32>
    %c0_4 = arith.constant 0 : index
    %c0_5 = arith.constant 0 : index
    %c0_6 = arith.constant 0 : index
    %4 = vector.load %arg5[%c0_4, %c0_5, %c0_6] : memref<1x8x32xf32, #tpu.memory_space<vmem>>, vector<1x8x32xf32>
    %5 = vector.shape_cast %4 : vector<1x8x32xf32> to vector<8x32xf32>
    %6 = vector.shape_cast %3 : vector<8x32xf32> to vector<1x8x32xf32>
    tpu.vector_store %arg5[%c0_4, %c0_5, %c0_6], %6 {strides = array<i32>} : memref<1x8x32xf32, #tpu.memory_space<vmem>>, vector<1x8x32xf32>,
    return
  }
  func.func @transform_0(%arg0: i32, %arg1: i32) -> i32 {
    %c0_i32 = arith.constant 0 : i32
    %c0_i32_0 = arith.constant 0 : i32
    return %c0_i32 : i32
  }
  func.func @transform_1(%arg0: i32, %arg1: i32) -> (i32, i32, i32) {
    %c0_i32 = arith.constant 0 : i32
    %c0_i32_0 = arith.constant 0 : i32
    return %arg0, %arg1, %c0_i32 : i32, i32, i32
  }
  func.func @transform_2(%arg0: i32, %arg1: i32) -> (i32, i32) {
    %c0_i32 = arith.constant 0 : i32
    %c0_i32_0 = arith.constant 0 : i32
    return %arg1, %c0_i32 : i32, i32
  }
  func.func @transform_3(%arg0: i32, %arg1: i32) -> (i32, i32, i32) {
    %c0_i32 = arith.constant 0 : i32
    %c0_i32_0 = arith.constant 0 : i32
    return %arg0, %arg1, %c0_i32 : i32, i32, i32
  }
}

</mosaic_0001>

<bundles_post_ra>
// kernel: tpu_custom_call.1
= control target key start
LH: loop header
LB: loop body
LE: loop exit
PB: predicated region body
PF: predicated region fallthrough
CT: control target
= control target key end

     0   :  { %9 = vsyncpa [#allocation4], 0  ;;  %s748_s0 = inlined_call_operand.<no memory space> [shape: s32[1], index: 0, kind: input, shape index: {}]   ;;  %s749_s1 = inlined_call_operand.hbm [shape: f32[2,8,32], index: 1, kind: input, shape index: {}]   ;;  %s750_s2 = inlined_call_operand.hbm [shape: f32[8,32], index: 2, kind: input, shape index: {}]   ;;  %s751_s3 = inlined_call_operand.hbm [shape: f32[2,8,32], index: 3, kind: output, shape index: {}]  }
   0x1   :  { %11 = vsyncpa [#allocation4 + $0x1], 0 }
   0x2   :  { %12 = vsyncpa [#allocation7], 0 }
   0x3   :  { %13 = vsyncpa [#allocation5], 0 }
   0x4   :  { %15 = vsyncpa [#allocation5 + $0x1], 0  ;;  %s587_s12 = smov 0   ;;  %s589_s13 = smov 0  }
   0x5   :  { %s591_s14 = smov 0   ;;  %s593_s0 = smov 0  }
   0x6   :  { %s595_s15 = smov 0   ;;  %s597_s16 = smov 0  }
   0x7 LB: > { %s336_s17 = sadd.s32 4294967295, %s562_s16   ;;  %s337_s18 = sadd.s32 4294967294, %s562_s16   ;;  %s562_s16 = sphi %s597_s16, %s21_s16   ;;  %s558_s15 = sphi %s595_s15, %s768_s15   ;;  %s554_s0 = sphi %s593_s0, %s767_s0   ;;  %s550_s14 = sphi %s591_s14, %s766_s14   ;;  %s546_s13 = sphi %s589_s13, %s765_s13   ;;  %s542_s12 = sphi %s587_s12, %s764_s12  }
   0x8   : > { %p76_p0 = scmp.ne.s32.totalorder %s546_s13, %s542_s12  ;;  %p621_p1 = scmp.eq.s32.totalorder %s336_s17, 0 }
   0x9   : > { %p625_p2 = scmp.eq.s32.totalorder %s336_s17, 1  ;;  %p134_p3 = scmp.eq.s32.totalorder %s337_s18, 1 }
   0xa   : > { %p631_p4 = por %p621_p1, %p76_p0  ;;  %p338_p5 = scmp.ge.s32.totalorder %s562_s16, 1 }
   0xb   : > { %p636_p6 = por %p134_p3, %p76_p0  ;;  %p141_p7 = scmp.lt.s32.totalorder %s562_s16, 3 }
   0xc   : > { %s755_s21 = scalar_select %p631_p4, 1, 0 }
   0xd   : > { %s756_s22 = scalar_select %p636_p6, 1, 0 }
   0xe   : > { %p641_p8 = pnand %p338_p5, %p141_p7  ;;  %s564_s24 = smov [#allocation6]  }
   0xf   : > { %s159_s25 = sshll.u32 %s564_s24, 4  ;;  %s33_s27 = sadd.s32 1, %s558_s15  ;;  %s160_s25 = int_to_ptr.vmem [resolvable:$true] %s159_s25 }
  0x10   : > { %p359_p10 = pneg %p641_p8  ;;  %s63_s28 = sadd.s32 1, %s550_s14 }
  0x11   : > { %p35_p12 = scmp.ge.s32.totalorder %s33_s27, 2  ;;  %s435_s29 = scalar_lea.vmem %s160_s25, 128 }
  0x12   : > { %p650_p11 = pnand %p359_p10, %p621_p1  ;;  %p436_p0 = scmp.ne.s32.totalorder %s160_s25, %s435_s29 }
  0x13   : > { %p443_p7 = scmp.lt.s32.totalorder %s160_s25, %s160_s25  ;;  %p444_p6 = scmp.lt.s32.totalorder %s435_s29, %s435_s29 }
  0x14   : > { %p426_p13 = pneg %p650_p11 }
  0x15   : > { %p445_p9 = por %p444_p6, %p443_p7 }
  0x16   : > { %p438_p3 = pnand %p436_p0, %p426_p13 }
  0x18   : > { %p439_p5 = pneg %p438_p3 }
  0x1a   : > { %p446_p4 = pnand %p445_p9, %p439_p5 }
  0x1c   : > { %449 = shalt.err (!%p446_p4)
}
  0x1d   : > { %362 = dma.hbm_to_vmem [thread:$0]  (!%p650_p11), %s750_s2, 128, %s160_s25, [#allocation7]  }
  0x1e   : > { %s770_s27 = smov (%p35_p12, %s33_s27), 0  ;;  %p70_p6 = scmp.ne.s32.totalorder %s550_s14, %s546_s13 }
  0x1f   : > { %p71_p4 = scmp.eq.s32.totalorder %s562_s16, 0  ;;  %s58_s5 = ssub.s32 %s558_s15, %s770_s27 }
  0x20   : > { %p372_p9 = scmp.lt.s32.totalorder %s562_s16, 2  ;;  %p61_p10 = scmp.eq.s32.totalorder %s58_s5, 0 }
  0x21   : > { %p72_p13 = por %p71_p4, %p70_p6  ;;  %p673_p0 = por %p625_p2, %p70_p6 }
  0x22   : > { %s170_s7 = sand.u32 1, %s550_s14   ;;  %s342_s10 = sshll.u32 %s558_s15, 7 }
  0x23   : > { %s679_s8 = scalar_select %p61_p10, %s550_s14, %s63_s28  }
  0x24   : > { %s341_s9 = sshll.u32 %s170_s7, 3  ;;  %s180_s18 = scalar_lea.hbm %s749_s1, %s342_s10 }
  0x25   : > { %s174_s24 = scalar_lea.vmem [#allocation3], %s341_s9  ;;  %p685_p11 = pnand %p372_p9, %p72_p13 }
  0x26   : > { %s182_s25 = sshll.u32 %s174_s24, 4  ;;  %s171_s20 = scalar_lea.sflag [#allocation4], %s170_s7  ;;  %s183_s25 = int_to_ptr.vmem [resolvable:$true] %s182_s25 }
  0x27   : > { %p452_p2 = pneg %p685_p11  ;;  %s463_s29 = scalar_lea.vmem %s183_s25, 128 }
  0x28   : > { %p464_p12 = scmp.ne.s32.totalorder %s183_s25, %s463_s29  ;;  %s565_s28 = smov [#allocation3]  }
  0x29   : > { %s468_s30 = sshll.u32 %s565_s28, 4  ;;  %s469_s30 = int_to_ptr.vmem [resolvable:$false] %s468_s30 }
  0x2a   : > { %p466_p3 = pnand %p464_p12, %p452_p2  ;;  %s470_s4 = scalar_lea.vmem %s469_s30, 256 }
  0x2b   : > { %p471_p7 = scmp.lt.s32.totalorder %s183_s25, %s469_s30  ;;  %p472_p6 = scmp.lt.s32.totalorder %s470_s4, %s463_s29 }
  0x2c   : > { %p467_p5 = pneg %p466_p3 }
  0x2d   : > { %p473_p4 = por %p472_p6, %p471_p7 }
  0x2f   : > { %p474_p10 = pnand %p473_p4, %p467_p5 }
  0x31   : > { %477 = shalt.err (!%p474_p10)
}
  0x32   : > { %366 = dma.hbm_to_vmem [thread:$0]  (!%p685_p11), %s180_s18, 128, %s183_s25, %s171_s20  }
  0x33   : > { %191 = sbr.rel (%p641_p8) target bundleno = 83 (0x53), region = 32  ;;  %s696_s5 = sand.u32 (!%p641_p8), 1, %s546_s13  }
  0x34   : > { %s344_s7 = sshll.u32 (!%p641_p8), %s696_s5, 3  ;;  %s194_s9 = scalar_lea.sflag (!%p641_p8), [#allocation4], %s696_s5 }
  0x35   : > { %s197_s10 = scalar_lea.vmem (!%p641_p8), [#allocation3], %s344_s7  ;;  %p761_p9 = scmp.ne.s32.totalorder (!%p641_p8), %s755_s21, 0 }
  0x38   : > { %529 = dma.done.wait (%p761_p9), %s194_s9, 128  }
  0x39   : > { %531 = vsyncadd (%p761_p9), %s194_s9, 4294967168 }
  0x3a   : > { %533 = dma.done.wait (%p621_p1), [#allocation7], 128  }
  0x3b   : > { %535 = vsyncadd (%p621_p1), [#allocation7], 4294967168  ;;  %s223_s23 = scalar_lea.vmem [#allocation8], %s344_s7  ;;  %s348_s17 = sshll.u32 %s554_s0, 7  ;;  %v224_v0 = vld [vmem:[%s197_s10] sm:$0xff]  ;;  %v225_v1 = vld [vmem:[#allocation6] sm:$0xff] }
  0x3c   : > { %s244_s11 = sshll.u32 %s223_s23, 4  ;;  %vm227_vm0 = vcmask 261120   ;;  %v226_v2 = vadd.f32 %v225_v1, %v224_v0  ;;  %s242_s24 = scalar_lea.hbm %s751_s3, %s348_s17  ;;  %s245_s11 = int_to_ptr.vmem [resolvable:$true] %s244_s11 }
  0x3d   : > { %s230_s25 = scalar_lea.sflag [#allocation5], %s696_s5  ;;  %s478_s26 = scalar_lea.vmem %s245_s11, 128 }
  0x3e   : > { %228 = vst.msk [vmem:[%s223_s23] sm:$0xff] %vm227_vm0, %v226_v2  ;;  %p479_p8 = scmp.ne.s32.totalorder %s245_s11, %s478_s26  ;;  %s566_s19 = smov [#allocation8]  }
  0x3f   : > { %s482_s20 = sshll.u32 %s566_s19, 4  ;;  %s483_s20 = int_to_ptr.vmem [resolvable:$false] %s482_s20 }
  0x40   : > { %p480_p1 = pnand %p479_p8, %p673_p0  ;;  %s484_s0 = scalar_lea.vmem %s483_s20, 256 }
  0x41   : > { %p485_p11 = scmp.lt.s32.totalorder %s245_s11, %s483_s20  ;;  %p486_p2 = scmp.lt.s32.totalorder %s484_s0, %s478_s26 }
  0x42   : > { %p481_p13 = pneg %p480_p1 }
  0x43   : > { %p487_p12 = por %p486_p2, %p485_p11 }
  0x45   : > { %p488_p3 = pnand %p487_p12, %p481_p13 }
  0x47   : > { %491 = shalt.err (!%p488_p3)
}
  0x48   : > { %s492_s29 = scalar_lea.hbm %s242_s24, 128  ;;  %s496_s4 = scalar_lea.hbm %s751_s3, 256 }
  0x49   : > { %p493_p5 = scmp.ne.s32.totalorder %s242_s24, %s492_s29  ;;  %p497_p4 = scmp.lt.s32.totalorder %s242_s24, %s751_s3 }
  0x4a   : > { %p498_p10 = scmp.lt.s32.totalorder %s496_s4, %s492_s29 }
  0x4b   : > { %p494_p7 = pnand %p493_p5, %p673_p0 }
  0x4c   : > { %p499_p9 = por %p498_p10, %p497_p4 }
  0x4d   : > { %p495_p6 = pneg %p494_p7 }
  0x4f   : > { %p500_p8 = pnand %p499_p9, %p495_p6 }
  0x51   : > { %503 = shalt.err (!%p500_p8)
}
  0x52   : > { %357 = dma.vmem_to_hbm [thread:$0]  (%p673_p0), %s245_s11, 128, %s242_s24, %s230_s25  }
  0x53 PF: > { %s256_s9 = sand.u32 1, %s542_s12   ;;  %p762_p1 = scmp.ne.s32.totalorder %s756_s22, 0 }
  0x54   : > { %p763_p13 = scmp.ge.s32.totalorder %s562_s16, 2  ;;  %s257_s10 = scalar_lea.sflag [#allocation5], %s256_s9 }
  0x56   : > { %p368_p11 = pnand %p763_p13, %p762_p1 }
  0x58   : > { %p369_p2 = pneg %p368_p11 }
  0x5a   : > { %537 = dma.done.wait (%p369_p2), %s257_s10, 128  }
  0x5b   : > { %539 = vsyncadd (%p369_p2), %s257_s10, 4294967168  ;;  %s21_s16 = sadd.s32 1, %s562_s16   ;;  %s764_s12 = smov %s546_s13 }
  0x5c   : > { %p18_p12 = scmp.ge.s32.totalorder %s21_s16, 4   ;;  %s765_s13 = smov %s550_s14 }
  0x5d   : > { %s766_s14 = smov %s679_s8  ;;  %s767_s0 = smov %s558_s15 }
  0x5e   : > { %s768_s15 = smov %s770_s27  ;;  %20 = sbr.rel (!%p18_p12) target bundleno = 7 (0x7), region = 82 }
  0x63   :  { %262 = vsyncpa [#allocation4], 1 }
  0x64   :  { %264 = vsyncpa [#allocation4 + $0x1], 1 }
  0x65   :  { %265 = vsyncpa [#allocation7], 1 }
  0x66   :  { %266 = vsyncpa [#allocation5], 1 }
  0x67   :  { %268 = vsyncpa [#allocation5 + $0x1], 1 }

</bundles_post_ra>
